<compile_context>
chip_gen: v6e
topology: v6e:2x2x1
jax: 0.10.0
libtpu: 0.0.40
codegen_flags: <defaults>
</compile_context>

<pallas_src>
import functools

import jax
import jax.numpy as jnp
from jax import lax
from jax.experimental import pallas as pl
from jax.experimental.pallas import tpu as pltpu


# ---------------------------------------------------------------------------
# Fused kernel: one-hot embed -> flattened outer product -> sum over S -> Linear
# ---------------------------------------------------------------------------
def _tpe_fused_kernel(fill_ref, role_ref, ftab_ref, rtab_ref, wt_ref, bias_ref,
                      out_ref, *, batch, seq):
    """
    fill_ref : (B*S, 1)            int32   filler ids
    role_ref : (B*S, 1)            int32   role ids
    ftab_ref : (num_fillers, F*R)  f32     filler table, columns repeated R times
    rtab_ref : (num_roles,   F*R)  f32     role table, columns tiled F times
    wt_ref   : (F*R, N)            f32     last_layer weight, pre-transposed
    bias_ref : (1, N)              f32     last_layer bias
    out_ref  : (B, N)              f32
    """
    bs = fill_ref.shape[0]
    nf = ftab_ref.shape[0]
    nr = rtab_ref.shape[0]
    f32 = jnp.float32

    # Exact one-hot selection matrices (VPU iota + compare; 0/1 values).
    oh_f = (fill_ref[...] ==
            lax.broadcasted_iota(jnp.int32, (bs, nf), 1)).astype(f32)   # (BS, NF)
    oh_r = (role_ref[...] ==
            lax.broadcasted_iota(jnp.int32, (bs, nr), 1)).astype(f32)   # (BS, NR)

    # Embedding lookup fused with the Kron/flatten expansion.  Both results
    # are lane-dense (BS, F*R) tiles; nothing narrow ever hits HBM.
    fe_rep = jnp.dot(oh_f, ftab_ref[...], preferred_element_type=f32)   # (BS, D)
    re_tile = jnp.dot(oh_r, rtab_ref[...], preferred_element_type=f32)  # (BS, D)

    # Flattened outer product per (batch, position):
    #   prod[i, f*R + r] = filler_embed[fillers[i], f] * role_embed[roles[i], r]
    prod = fe_rep * re_tile                                             # (BS, D)

    # Sum over the S positions of each batch element via a block-diagonal
    # selector: sel[b, b*S + s] = 1.  This reproduces
    # torch.bmm(filler^T, role).view(B, -1) exactly (row-major over (f, r)).
    row = lax.broadcasted_iota(jnp.int32, (batch, bs), 0)
    col = lax.broadcasted_iota(jnp.int32, (batch, bs), 1)
    start = row * seq
    sel = ((col >= start) & (col < start + seq)).astype(f32)            # (B, BS)
    flat = jnp.dot(sel, prod, preferred_element_type=f32)               # (B, D)

    # Final Linear (weight pre-transposed offline; bias broadcasts over B).
    # Output is only N=64 lanes wide -> a single masked store; negligible here.
    out_ref[...] = (jnp.dot(flat, wt_ref[...], preferred_element_type=f32)
                    + bias_ref[...])


# ---------------------------------------------------------------------------
# One-time parameter restructuring (done once, NOT per forward)
# ---------------------------------------------------------------------------
def prepare_params(params):
    filler_embed = jnp.asarray(params["filler_embed"], jnp.float32)   # (NF, F)
    role_embed = jnp.asarray(params["role_embed"], jnp.float32)       # (NR, R)
    last_w = jnp.asarray(params["last_w"], jnp.float32)               # (N, F*R)
    last_b = jnp.asarray(params["last_b"], jnp.float32)               # (N,)
    filler_dim = filler_embed.shape[1]
    role_dim = role_embed.shape[1]
    return {
        # filler_rep[v, f*R + r] = filler_embed[v, f]
        "filler_rep": jnp.repeat(filler_embed, role_dim, axis=1),      # (NF, F*R)
        # role_tile[v, f*R + r] = role_embed[v, r]
        "role_tile": jnp.tile(role_embed, (1, filler_dim)),            # (NR, F*R)
        "w_t": last_w.T,                                               # (F*R, N)
        "bias": last_b.reshape(1, -1),                                 # (1, N)
    }


# ---------------------------------------------------------------------------
# Forward pass (single pallas_call, no grid)
# ---------------------------------------------------------------------------
@jax.jit
def tensor_product_encoder_forward(fillers, roles, prep):
    b, s = fillers.shape
    d, n = prep["w_t"].shape
    nf = prep["filler_rep"].shape[0]
    nr = prep["role_tile"].shape[0]

    fill2d = fillers.reshape(b * s, 1).astype(jnp.int32)
    role2d = roles.reshape(b * s, 1).astype(jnp.int32)

    flops = 2 * (b * s * nf * d + b * s * nr * d + b * (b * s) * d + b * d * n)
    bytes_accessed = 4 * (2 * b * s + nf * d + nr * d + d * n + n + b * n)

    vmem_spec = pl.BlockSpec(memory_space=pltpu.MemorySpace.VMEM)

    out = pl.pallas_call(
        functools.partial(_tpe_fused_kernel, batch=b, seq=s),
        out_shape=jax.ShapeDtypeStruct((b, n), jnp.float32),
        in_specs=[vmem_spec] * 6,
        out_specs=vmem_spec,
        cost_estimate=pl.CostEstimate(
            flops=flops, transcendentals=0, bytes_accessed=bytes_accessed),
    )(fill2d, role2d, prep["filler_rep"], prep["role_tile"],
      prep["w_t"], prep["bias"])

    return out[None, :, :]                                             # (1, B, N)


# ---------------------------------------------------------------------------
# Reference (pure jnp) for sanity checking
# ---------------------------------------------------------------------------
def reference_forward(fillers, roles, params):
    filler_e = jnp.take(params["filler_embed"], fillers, axis=0)
    role_e = jnp.take(params["role_embed"], roles, axis=0)
    outer = jnp.einsum("bsf,bsr->bfr", filler_e, role_e)
    flat = outer.reshape(outer.shape[0], -1)
    out = flat @ params["last_w"].T + params["last_b"]
    return out[None, :, :]


if __name__ == "__main__":
    # Module config (pretrained_embeddings=None, untrained=False path)
    num_roles = 10
    num_fillers = 20
    role_dim = 16
    filler_dim = 32
    final_layer_width = 64
    B, S = 2, 8

    key = jax.random.PRNGKey(0)
    k1, k2, k3, k4, k5, k6 = jax.random.split(key, 6)

    params = {
        "role_embed": jax.random.normal(k1, (num_roles, role_dim), jnp.float32),
        "filler_embed": jax.random.normal(k2, (num_fillers, filler_dim), jnp.float32),
        "last_w": jax.random.normal(
            k3, (final_layer_width, filler_dim * role_dim), jnp.float32) * 0.05,
        "last_b": jax.random.normal(k4, (final_layer_width,), jnp.float32) * 0.05,
    }

    fillers = jax.random.randint(k5, (B, S), 0, num_fillers, dtype=jnp.int32)
    roles = jax.random.randint(k6, (B, S), 0, num_roles, dtype=jnp.int32)

    prep = prepare_params(params)            # one-time restructuring

    out = tensor_product_encoder_forward(fillers, roles, prep)
    out = jax.block_until_ready(out)

    ref = reference_forward(fillers, roles, params)
    assert out.shape == (1, B, final_layer_width), out.shape
    assert jnp.allclose(out, ref, atol=1e-3, rtol=1e-3), "mismatch vs reference"

    print("KERNEL_OK")
</pallas_src>

<mosaic_0001>
module attributes {stable_mosaic.version = 11 : i64} {
  func.func @_tpe_fused_kernel(%arg0: memref<16x1xi32, #tpu.memory_space<vmem>>, %arg1: memref<16x1xi32, #tpu.memory_space<vmem>>, %arg2: memref<20x512xf32, #tpu.memory_space<vmem>>, %arg3: memref<10x512xf32, #tpu.memory_space<vmem>>, %arg4: memref<512x64xf32, #tpu.memory_space<vmem>>, %arg5: memref<1x64xf32, #tpu.memory_space<vmem>>, %arg6: memref<2x64xf32, #tpu.memory_space<vmem>>) attributes {dimension_semantics = [], scalar_prefetch = 0 : i64, scratch_operands = 0 : i64, tpu.core_type = #tpu.core_type<tc>} {
    %c0 = arith.constant 0 : index
    %c0_0 = arith.constant 0 : index
    %0 = vector.load %arg0[%c0, %c0_0] : memref<16x1xi32, #tpu.memory_space<vmem>>, vector<16x1xi32>
    %1 = tpu.iota {dimensions = array<i32: 1>} : vector<16x20xi32>
    %2 = vector.broadcast %0 : vector<16x1xi32> to vector<16x20xi32>
    %3 = arith.cmpi eq, %2, %1 : vector<16x20xi32>
    %4 = arith.extui %3 : vector<16x20xi1> to vector<16x20xi32>
    %5 = arith.sitofp %4 : vector<16x20xi32> to vector<16x20xf32>
    %c0_1 = arith.constant 0 : index
    %c0_2 = arith.constant 0 : index
    %6 = vector.load %arg1[%c0_1, %c0_2] : memref<16x1xi32, #tpu.memory_space<vmem>>, vector<16x1xi32>
    %7 = tpu.iota {dimensions = array<i32: 1>} : vector<16x10xi32>
    %8 = vector.broadcast %6 : vector<16x1xi32> to vector<16x10xi32>
    %9 = arith.cmpi eq, %8, %7 : vector<16x10xi32>
    %10 = arith.extui %9 : vector<16x10xi1> to vector<16x10xi32>
    %11 = arith.sitofp %10 : vector<16x10xi32> to vector<16x10xf32>
    %c0_3 = arith.constant 0 : index
    %c0_4 = arith.constant 0 : index
    %12 = vector.load %arg2[%c0_3, %c0_4] : memref<20x512xf32, #tpu.memory_space<vmem>>, vector<20x512xf32>
    %cst = arith.constant dense<0.000000e+00> : vector<16x512xf32>
    %13 = tpu.matmul %5, %12, %cst {dimension_numbers = #tpu.dot_dimension_numbers<[1], [0], [0], [1], [0, 0, 1, 1], [], []>} : vector<16x20xf32>, vector<20x512xf32>, vector<16x512xf32> -> vector<16x512xf32>
    %c0_5 = arith.constant 0 : index
    %c0_6 = arith.constant 0 : index
    %14 = vector.load %arg3[%c0_5, %c0_6] : memref<10x512xf32, #tpu.memory_space<vmem>>, vector<10x512xf32>
    %cst_7 = arith.constant dense<0.000000e+00> : vector<16x512xf32>
    %15 = tpu.matmul %11, %14, %cst_7 {dimension_numbers = #tpu.dot_dimension_numbers<[1], [0], [0], [1], [0, 0, 1, 1], [], []>} : vector<16x10xf32>, vector<10x512xf32>, vector<16x512xf32> -> vector<16x512xf32>
    %16 = arith.mulf %13, %15 : vector<16x512xf32>
    %17 = tpu.iota {dimensions = array<i32: 0>} : vector<2x16xi32>
    %18 = tpu.iota {dimensions = array<i32: 1>} : vector<2x16xi32>
    %c8_i32 = arith.constant 8 : i32
    %19 = vector.broadcast %c8_i32 : i32 to vector<2x16xi32>
    %20 = arith.muli %17, %19 : vector<2x16xi32>
    %21 = arith.cmpi sge, %18, %20 : vector<2x16xi32>
    %c8_i32_8 = arith.constant 8 : i32
    %22 = vector.broadcast %c8_i32_8 : i32 to vector<2x16xi32>
    %23 = arith.addi %20, %22 : vector<2x16xi32>
    %24 = arith.cmpi slt, %18, %23 : vector<2x16xi32>
    %25 = arith.andi %21, %24 : vector<2x16xi1>
    %26 = arith.extui %25 : vector<2x16xi1> to vector<2x16xi32>
    %27 = arith.sitofp %26 : vector<2x16xi32> to vector<2x16xf32>
    %cst_9 = arith.constant dense<0.000000e+00> : vector<2x512xf32>
    %28 = tpu.matmul %27, %16, %cst_9 {dimension_numbers = #tpu.dot_dimension_numbers<[1], [0], [0], [1], [0, 0, 1, 1], [], []>} : vector<2x16xf32>, vector<16x512xf32>, vector<2x512xf32> -> vector<2x512xf32>
    %c0_10 = arith.constant 0 : index
    %c0_11 = arith.constant 0 : index
    %29 = vector.load %arg4[%c0_10, %c0_11] : memref<512x64xf32, #tpu.memory_space<vmem>>, vector<512x64xf32>
    %cst_12 = arith.constant dense<0.000000e+00> : vector<2x64xf32>
    %30 = tpu.matmul %28, %29, %cst_12 {dimension_numbers = #tpu.dot_dimension_numbers<[1], [0], [0], [1], [0, 0, 1, 1], [], []>} : vector<2x512xf32>, vector<512x64xf32>, vector<2x64xf32> -> vector<2x64xf32>
    %c0_13 = arith.constant 0 : index
    %c0_14 = arith.constant 0 : index
    %31 = vector.load %arg5[%c0_13, %c0_14] : memref<1x64xf32, #tpu.memory_space<vmem>>, vector<1x64xf32>
    %32 = vector.broadcast %31 : vector<1x64xf32> to vector<2x64xf32>
    %33 = arith.addf %30, %32 : vector<2x64xf32>
    %c0_15 = arith.constant 0 : index
    %c0_16 = arith.constant 0 : index
    %34 = vector.load %arg6[%c0_15, %c0_16] : memref<2x64xf32, #tpu.memory_space<vmem>>, vector<2x64xf32>
    tpu.vector_store %arg6[%c0_15, %c0_16], %33 {strides = array<i32>} : memref<2x64xf32, #tpu.memory_space<vmem>>, vector<2x64xf32>,
    return
  }
}

</mosaic_0001>

<bundles_post_ra>
// kernel: tensor_product_encoder_forward.1
= control target key start
LH: loop header
LB: loop body
LE: loop exit
PB: predicated region body
PF: predicated region fallthrough
CT: control target
= control target key end

     0   :  { %vm73_vm0 = vcmask 1043456   ;;  %v933_v2 = vmov 0   ;;  %vm255_vm1 = vcmask 1041408   ;;  %s1276_s0 = inlined_call_operand.vmem [shape: s32[16,1], index: 0, kind: input, shape index: {}]   ;;  %s1277_s1 = inlined_call_operand.vmem [shape: s32[16,1], index: 1, kind: input, shape index: {}]   ;;  %s1278_s2 = inlined_call_operand.vmem [shape: f32[20,512], index: 2, kind: input, shape index: {}]   ;;  %s1279_s3 = inlined_call_operand.vmem [shape: f32[10,512], index: 3, kind: input, shape index: {}]   ;;  %s1280_s4 = inlined_call_operand.vmem [shape: f32[512,64], index: 4, kind: input, shape index: {}]   ;;  %s1281_s5 = inlined_call_operand.vmem [shape: f32[1,64], index: 5, kind: input, shape index: {}]   ;;  %s1282_s6 = inlined_call_operand.hbm [shape: f32[2,64], index: 6, kind: output, shape index: {}]  }
   0x1   :  { %v24_v0 = vld [vmem:[%s1276_s0] sm:$0xff]  ;;  %909 = vset.pattern.permute.xlu0 %v933_v2  ;;  %910 = vset.pattern.permute.xlu1 %v933_v2  ;;  %v63_v3 = vld [vmem:[%s1278_s2 + $0x48] sm:$0xf]  ;;  %v65_v4 = vld [vmem:[%s1278_s2 + $0x58] sm:$0xf] }
   0x2   :  { %v40_v1 = vld [vmem:[%s1277_s1] sm:$0xff]  ;;  %29 = vperm.xlu0 %909, %v24_v0   ;;  %v64_v6 = vld [vmem:[%s1278_s2 + $0x50] sm:$0xf]  ;;  %v59_v7 = vld [vmem:[%s1278_s2 + $0x28] sm:$0xff]  ;;  %816 = vmatprep.subr.msk.mxu0 %vm73_vm0, %v63_v3 }
   0x3   :  { %43 = vperm.xlu1 %910, %v40_v1   ;;  %v62_v5 = vld [vmem:[%s1278_s2 + $0x40] sm:$0xf]  ;;  %v25_v8 = vld [vmem:[%s1276_s0 + $0x8] sm:$0xff]  ;;  %820 = vmatprep.subr.msk.mxu1 %vm73_vm0, %v65_v4  ;;  %v61_v10 = vld [vmem:[%s1278_s2 + $0x38] sm:$0xff] }
   0x4   :  { %v41_v9 = vld [vmem:[%s1277_s1 + $0x8] sm:$0xff]  ;;  %817 = vmatpush1.msk.msra.mxu0 %vm73_vm0, %v62_v5  ;;  %821 = vmatpush1.msk.msra.mxu1 %vm73_vm0, %v64_v6  ;;  %v58_v11 = vld [vmem:[%s1278_s2 + $0x20] sm:$0xff]  ;;  %v60_v12 = vld [vmem:[%s1278_s2 + $0x30] sm:$0xff] }
   0x5   :  { %114 = vmatprep.subr.mxu0 %v59_v7  ;;  %191 = vmatprep.subr.mxu1 %v61_v10  ;;  %v55_v13 = vld [vmem:[%s1278_s2 + $0x8] sm:$0xff]  ;;  %v57_v14 = vld [vmem:[%s1278_s2 + $0x18] sm:$0xff]  ;;  %v54_v15 = vld [vmem:[%s1278_s2] sm:$0xff] }
   0x6   :  { %32 = vperm.xlu0 %909, %v25_v8   ;;  %115 = vmatpush1.msra.mxu0 %v58_v11  ;;  %v56_v16 = vld [vmem:[%s1278_s2 + $0x10] sm:$0xff]  ;;  %v245_v17 = vld [vmem:[%s1279_s3 + $0x28] sm:$0x3]  ;;  %v247_v18 = vld [vmem:[%s1279_s3 + $0x38] sm:$0x3] }
   0x7   :  { %46 = vperm.xlu1 %910, %v41_v9   ;;  %192 = vmatpush1.msra.mxu1 %v60_v12 }
   0x8   :  { %116 = vmatprep.subr.mxu0 %v55_v13  ;;  %193 = vmatprep.subr.mxu1 %v57_v14 }
   0x9   :  { %11 = vsyncpa [#allocation3], 0  ;;  %117 = vmatpush1.msra.mxu0 %v54_v15  ;;  %v934_v19 = vmov 0.0   ;;  %194 = vmatpush1.msra.mxu1 %v56_v16  ;;  %v26_v20 = vlaneseq  ;;  %vm66_vm2 = vcmask 162816   ;;  %v244_v25 = vld [vmem:[%s1279_s3 + $0x20] sm:$0x3] }
   0xa   :  { %150 = vmatprep.mubr.f32.mxu0 %v934_v19  ;;  %227 = vmatprep.mubr.f32.mxu1 %v934_v19  ;;  %v246_v26 = vld [vmem:[%s1279_s3 + $0x30] sm:$0x3]  ;;  %v241_v27 = vld [vmem:[%s1279_s3 + $0x8] sm:$0xff]  ;;  %v243_v28 = vld [vmem:[%s1279_s3 + $0x18] sm:$0xff]  ;;  %vm248_vm6 = vcmask 80896   ;;  %vm439_vm11 = vcmask 130048  }
   0xb   :  { %824 = vmatprep.subr.msk.mxu0 %vm255_vm1, %v245_v17  ;;  %828 = vmatprep.subr.msk.mxu1 %vm255_vm1, %v247_v18  ;;  %v1033_v21 = vand.u32 127, %v26_v20  ;;  %v240_v30 = vld [vmem:[%s1279_s3] sm:$0xff]  ;;  %v242_v32 = vld [vmem:[%s1279_s3 + $0x10] sm:$0xff]  ;;  %v431_v38 = vshrl.u32 %v26_v20, 7  ;;  %v616_v0 = vld [vmem:[%s1280_s4 + $0xf8] sm:$0xff]  ;;  %vm796_vm12 = vcmask 517120  }
   0xc   :  { %v648_v1 = vld [vmem:[%s1280_s4 + $0x1f8] sm:$0xff]  ;;  %v615_v4 = vld [vmem:[%s1280_s4 + $0xf0] sm:$0xff]  ;;  %v614_v8 = vld [vmem:[%s1280_s4 + $0xe8] sm:$0xff] }
   0xd   :  { %v432_v43 = vmul.u32 8, %v431_v38  ;;  %v600_v2 = vld [vmem:[%s1280_s4 + $0x78] sm:$0xff]  ;;  %v647_v5 = vld [vmem:[%s1280_s4 + $0x1f0] sm:$0xff]  ;;  %v646_v9 = vld [vmem:[%s1280_s4 + $0x1e8] sm:$0xff] }
   0xe   :  { %v632_v3 = vld [vmem:[%s1280_s4 + $0x178] sm:$0xff]  ;;  %v599_v6 = vld [vmem:[%s1280_s4 + $0x70] sm:$0xff]  ;;  %v598_v10 = vld [vmem:[%s1280_s4 + $0x68] sm:$0xff] }
   0xf   :  { %v434_v48 = vadd.s32 8, %v432_v43  ;;  %vm433_vm8 = vcmp.ge.s32.totalorder %v1033_v21, %v432_v43  ;;  %v631_v7 = vld [vmem:[%s1280_s4 + $0x170] sm:$0xff]  ;;  %v630_v11 = vld [vmem:[%s1280_s4 + $0x168] sm:$0xff]  ;;  %v613_v12 = vld [vmem:[%s1280_s4 + $0xe0] sm:$0xff] }
  0x10   :  { %v645_v13 = vld [vmem:[%s1280_s4 + $0x1e0] sm:$0xff]  ;;  %v612_v16 = vld [vmem:[%s1280_s4 + $0xd8] sm:$0xff]  ;;  %v611_v20 = vld [vmem:[%s1280_s4 + $0xd0] sm:$0xff] }
  0x11   :  { %vm435_vm9 = vcmp.lt.s32.totalorder %v1033_v21, %v434_v48  ;;  %v597_v14 = vld [vmem:[%s1280_s4 + $0x60] sm:$0xff]  ;;  %v644_v17 = vld [vmem:[%s1280_s4 + $0x1d8] sm:$0xff]  ;;  %v591_v38 = vld [vmem:[%s1280_s4 + $0x30] sm:$0xff] }
  0x12   :  { %vm436_vm10 = vmand %vm433_vm8, %vm435_vm9  ;;  %v629_v15 = vld [vmem:[%s1280_s4 + $0x160] sm:$0xff]  ;;  %v596_v18 = vld [vmem:[%s1280_s4 + $0x58] sm:$0xff] }
  0x13   :  { %v832_v63 = vsel %vm436_vm10, 1.0, %v934_v19  ;;  %v622_v43 = vld [vmem:[%s1280_s4 + $0x128] sm:$0xff]  ;;  %v604_v48 = vld [vmem:[%s1280_s4 + $0x98] sm:$0xff] }
  0x7d   :  { %v30_v22 = vpop.permute.xlu0 %29 }
  0x7e   :  { %vm34_vm3 = vcmp.eq.s32.totalorder %v30_v22, %v1033_v21  ;;  %v44_v24 = vpop.permute.xlu1 %43  ;;  %v595_v22 = vld [vmem:[%s1280_s4 + $0x50] sm:$0xff] }
  0x7f   :  { %v812_v23 = vsel %vm34_vm3, 1.0, %v934_v19  ;;  %vm48_vm4 = vcmp.eq.s32.totalorder %v44_v24, %v1033_v21  ;;  %v610_v24 = vld [vmem:[%s1280_s4 + $0xc8] sm:$0xff] }
  0x80   :  { %818 = vmatmul.mubr.msk.f32.vlgmr.msra.gmra.mxu0 %vm66_vm2, %v812_v23  ;;  %822 = vmatmul.mubr.msk.f32.vlgmr.msra.gmra.mxu1 %vm66_vm2, %v812_v23  ;;  %v814_v33 = vsel %vm48_vm4, 1.0, %v934_v19  ;;  %v627_v23 = vld [vmem:[%s1280_s4 + $0x150] sm:$0xff] }
  0x81   :  { %v33_v29 = vpop.permute.xlu0 %32  ;;  %156 = vmatprep.mubr.f32.mxu0 %v934_v19  ;;  %233 = vmatprep.mubr.f32.mxu1 %v934_v19 }
  0x82   :  { %vm35_vm5 = vcmp.eq.s32.totalorder %v33_v29, %v1033_v21  ;;  %825 = vmatpush1.msk.msra.mxu0 %vm255_vm1, %v244_v25  ;;  %829 = vmatpush1.msk.msra.mxu1 %vm255_vm1, %v246_v26  ;;  %v47_v34 = vpop.permute.xlu1 %46  ;;  %v642_v25 = vld [vmem:[%s1280_s4 + $0x1c8] sm:$0xff]  ;;  %v641_v29 = vld [vmem:[%s1280_s4 + $0x1c0] sm:$0xff] }
  0x83   :  { %v813_v31 = vsel %vm35_vm5, 1.0, %v934_v19  ;;  %298 = vmatprep.subr.mxu0 %v241_v27  ;;  %375 = vmatprep.subr.mxu1 %v243_v28  ;;  %vm49_vm7 = vcmp.eq.s32.totalorder %v47_v34, %v1033_v21  ;;  %v643_v21 = vld [vmem:[%s1280_s4 + $0x1d0] sm:$0xff]  ;;  %v594_v26 = vld [vmem:[%s1280_s4 + $0x48] sm:$0xff]  ;;  %v609_v28 = vld [vmem:[%s1280_s4 + $0xc0] sm:$0xff] }
  0x84   :  { %819 = vmatmul.mubr.msk.f32.gmra.mxu0 %vm66_vm2, %v813_v31  ;;  %823 = vmatmul.mubr.msk.f32.gmra.mxu1 %vm66_vm2, %v813_v31  ;;  %v815_v35 = vsel %vm49_vm7, 1.0, %v934_v19  ;;  %v626_v27 = vld [vmem:[%s1280_s4 + $0x148] sm:$0xff]  ;;  %v625_v31 = vld [vmem:[%s1280_s4 + $0x140] sm:$0xff]  ;;  %v592_v34 = vld [vmem:[%s1280_s4 + $0x38] sm:$0xff] }
  0x85   :  { %299 = vmatpush1.msra.mxu0 %v240_v30  ;;  %332 = vmatprep.mubr.f32.mxu0 %v934_v19  ;;  %v593_v30 = vld [vmem:[%s1280_s4 + $0x40] sm:$0xff] }
  0x86   :  { %376 = vmatpush1.msra.mxu1 %v242_v32  ;;  %409 = vmatprep.mubr.f32.mxu1 %v934_v19  ;;  %v608_v32 = vld [vmem:[%s1280_s4 + $0xb8] sm:$0xff] }
  0x88   :  { %826 = vmatmul.mubr.msk.f32.vlgmr.msra.gmra.mxu0 %vm248_vm6, %v814_v33  ;;  %830 = vmatmul.mubr.msk.f32.vlgmr.msra.gmra.mxu1 %vm248_vm6, %v814_v33  ;;  %v640_v33 = vld [vmem:[%s1280_s4 + $0x1b8] sm:$0xff] }
  0x89   :  { %338 = vmatprep.mubr.f32.mxu0 %v934_v19  ;;  %415 = vmatprep.mubr.f32.mxu1 %v934_v19 }
  0x8c   :  { %827 = vmatmul.mubr.msk.f32.gmra.mxu0 %vm248_vm6, %v815_v35  ;;  %831 = vmatmul.mubr.msk.f32.gmra.mxu1 %vm248_vm6, %v815_v35  ;;  %v624_v35 = vld [vmem:[%s1280_s4 + $0x138] sm:$0xff] }
  0x8d   :  { %507 = vmatprep.mubr.f32.mxu0 %v934_v19  ;;  %578 = vmatprep.mubr.f32.mxu1 %v934_v19  ;;  %v628_v19 = vld [vmem:[%s1280_s4 + $0x158] sm:$0xff] }
 0x140   :  { %v152_v36 = vpop.f32.mrf.mxu0  ;;  %v229_v37 = vpop.f32.mrf.mxu1 }
 0x142   :  { %v154_v39 = vpop.f32.mrf.mxu0  ;;  %v231_v40 = vpop.f32.mrf.mxu1 }
 0x144   :  { %v158_v41 = vpop.f32.mrf.mxu0  ;;  %v235_v42 = vpop.f32.mrf.mxu1 }
 0x146   :  { %v160_v44 = vpop.f32.mrf.mxu0  ;;  %v237_v45 = vpop.f32.mrf.mxu1 }
 0x148   :  { %v334_v46 = vpop.f32.mrf.mxu0  ;;  %v411_v47 = vpop.f32.mrf.mxu1 }
 0x149   :  { %v422_v61 = vmul.f32 %v334_v46, %v152_v36  ;;  %v424_v62 = vmul.f32 %v411_v47, %v229_v37  ;;  %v607_v36 = vld [vmem:[%s1280_s4 + $0xb0] sm:$0xff]  ;;  %v589_v46 = vld [vmem:[%s1280_s4 + $0x20] sm:$0xff] }
 0x14a   :  { %v336_v49 = vpop.f32.mrf.mxu0  ;;  %v413_v50 = vpop.f32.mrf.mxu1  ;;  %v639_v37 = vld [vmem:[%s1280_s4 + $0x1b0] sm:$0xff]  ;;  %v621_v47 = vld [vmem:[%s1280_s4 + $0x120] sm:$0xff] }
 0x14b   :  { %v423_v59 = vmul.f32 %v336_v49, %v154_v39  ;;  %v425_v60 = vmul.f32 %v413_v50, %v231_v40  ;;  %v623_v39 = vld [vmem:[%s1280_s4 + $0x130] sm:$0xff]  ;;  %v606_v40 = vld [vmem:[%s1280_s4 + $0xa8] sm:$0xff]  ;;  %v636_v49 = vld [vmem:[%s1280_s4 + $0x198] sm:$0xff] }
 0x14c   :  { %v340_v51 = vpop.f32.mrf.mxu0  ;;  %v417_v52 = vpop.f32.mrf.mxu1  ;;  %v588_v50 = vld [vmem:[%s1280_s4 + $0x18] sm:$0xff] }
 0x14d   :  { %v426_v57 = vmul.f32 %v340_v51, %v158_v41  ;;  %v428_v58 = vmul.f32 %v417_v52, %v235_v42  ;;  %v638_v41 = vld [vmem:[%s1280_s4 + $0x1a8] sm:$0xff]  ;;  %v620_v51 = vld [vmem:[%s1280_s4 + $0x118] sm:$0xff]  ;;  %v603_v52 = vld [vmem:[%s1280_s4 + $0x90] sm:$0xff] }
 0x14e   :  { %v342_v53 = vpop.f32.mrf.mxu0  ;;  %v419_v54 = vpop.f32.mrf.mxu1  ;;  %v590_v42 = vld [vmem:[%s1280_s4 + $0x28] sm:$0xff] }
 0x14f   :  { %v427_v55 = vmul.f32 %v342_v53, %v160_v44  ;;  %v429_v56 = vmul.f32 %v419_v54, %v237_v45  ;;  %v605_v44 = vld [vmem:[%s1280_s4 + $0xa0] sm:$0xff]  ;;  %v587_v53 = vld [vmem:[%s1280_s4 + $0x10] sm:$0xff] }
 0x150   :  { %v637_v45 = vld [vmem:[%s1280_s4 + $0x1a0] sm:$0xff]  ;;  %v635_v54 = vld [vmem:[%s1280_s4 + $0x190] sm:$0xff] }
 0x151   :  { %471 = vmatprep.subr.mxu0 %v427_v55  ;;  %542 = vmatprep.subr.mxu1 %v429_v56  ;;  %v619_v55 = vld [vmem:[%s1280_s4 + $0x110] sm:$0xff]  ;;  %v602_v56 = vld [vmem:[%s1280_s4 + $0x88] sm:$0xff] }
 0x152   :  { %472 = vmatpush1.msra.mxu0 %v426_v57  ;;  %543 = vmatpush1.msra.mxu1 %v428_v58  ;;  %v634_v57 = vld [vmem:[%s1280_s4 + $0x188] sm:$0xff] }
 0x153   :  { %473 = vmatprep.subr.mxu0 %v423_v59  ;;  %544 = vmatprep.subr.mxu1 %v425_v60  ;;  %v586_v58 = vld [vmem:[%s1280_s4 + $0x8] sm:$0xff]  ;;  %v601_v60 = vld [vmem:[%s1280_s4 + $0x80] sm:$0xff] }
 0x154   :  { %474 = vmatpush1.msra.mxu0 %v422_v61  ;;  %545 = vmatpush1.msra.mxu1 %v424_v62  ;;  %v618_v59 = vld [vmem:[%s1280_s4 + $0x108] sm:$0xff]  ;;  %v633_v61 = vld [vmem:[%s1280_s4 + $0x180] sm:$0xff] }
 0x155   :  { %833 = vmatmul.mubr.msk.f32.vlgmr.msra.gmra.mxu0 %vm439_vm11, %v832_v63  ;;  %834 = vmatmul.mubr.msk.f32.vlgmr.msra.gmra.mxu1 %vm439_vm11, %v832_v63  ;;  %v585_v62 = vld [vmem:[%s1280_s4] sm:$0xff] }
 0x156   :  { %836 = vmatprep.subr.mxu0 %v616_v0  ;;  %871 = vmatprep.subr.mxu1 %v648_v1  ;;  %v617_v63 = vld [vmem:[%s1280_s4 + $0x100] sm:$0xff]  ;;  %s935_s4 = smov [#allocation2]  }
 0x157   :  { %837 = vmatpush3.msra.mxu0 %v600_v2  ;;  %872 = vmatpush3.msra.mxu1 %v632_v3  ;;  %s804_s8 = sshll.u32 %s935_s4, 4  ;;  %s805_s8 = int_to_ptr.vmem [resolvable:$true] %s804_s8 }
 0x158   :  { %838 = vmatprep.subr.mxu0 %v615_v4  ;;  %873 = vmatprep.subr.mxu1 %v647_v5  ;;  %s911_s9 = scalar_lea.vmem %s805_s8, 32  ;;  %p916_p1 = scmp.lt.s32.totalorder %s805_s8, %s805_s8 }
 0x159   :  { %839 = vmatpush3.msra.mxu0 %v599_v6  ;;  %874 = vmatpush3.msra.mxu1 %v631_v7  ;;  %v835_v6 = vld [vmem:[%s1281_s5] ss:$0 sm:$0xff]  ;;  %p912_p0 = scmp.ne.s32.totalorder %s805_s8, %s911_s9  ;;  %p917_p2 = scmp.lt.s32.totalorder %s911_s9, %s911_s9 }
 0x15a   :  { %840 = vmatprep.subr.mxu0 %v614_v8  ;;  %875 = vmatprep.subr.mxu1 %v646_v9 }
 0x15b   :  { %841 = vmatpush3.msra.mxu0 %v598_v10  ;;  %876 = vmatpush3.msra.mxu1 %v630_v11  ;;  %p918_p3 = por %p917_p2, %p916_p1 }
 0x15c   :  { %842 = vmatprep.subr.mxu0 %v613_v12  ;;  %877 = vmatprep.subr.mxu1 %v645_v13 }
 0x15d   :  { %843 = vmatpush3.msra.mxu0 %v597_v14  ;;  %878 = vmatpush3.msra.mxu1 %v629_v15  ;;  %p919_p4 = pnand %p918_p3, %p912_p0 }
 0x15e   :  { %844 = vmatprep.subr.mxu0 %v612_v16  ;;  %879 = vmatprep.subr.mxu1 %v644_v17 }
 0x15f   :  { %845 = vmatpush3.msra.mxu0 %v596_v18  ;;  %880 = vmatpush3.msra.mxu1 %v628_v19 }
 0x160   :  { %846 = vmatprep.subr.mxu0 %v611_v20  ;;  %881 = vmatprep.subr.mxu1 %v643_v21 }
 0x161   :  { %847 = vmatpush3.msra.mxu0 %v595_v22  ;;  %882 = vmatpush3.msra.mxu1 %v627_v23 }
 0x162   :  { %848 = vmatprep.subr.mxu0 %v610_v24  ;;  %883 = vmatprep.subr.mxu1 %v642_v25 }
 0x163   :  { %849 = vmatpush3.msra.mxu0 %v594_v26  ;;  %884 = vmatpush3.msra.mxu1 %v626_v27 }
 0x164   :  { %850 = vmatprep.subr.mxu0 %v609_v28  ;;  %885 = vmatprep.subr.mxu1 %v641_v29 }
 0x165   :  { %851 = vmatpush3.msra.mxu0 %v593_v30  ;;  %886 = vmatpush3.msra.mxu1 %v625_v31 }
 0x166   :  { %852 = vmatprep.subr.mxu0 %v608_v32  ;;  %887 = vmatprep.subr.mxu1 %v640_v33 }
 0x167   :  { %853 = vmatpush3.msra.mxu0 %v592_v34  ;;  %888 = vmatpush3.msra.mxu1 %v624_v35 }
 0x168   :  { %854 = vmatprep.subr.mxu0 %v607_v36  ;;  %889 = vmatprep.subr.mxu1 %v639_v37 }
 0x169   :  { %855 = vmatpush3.msra.mxu0 %v591_v38  ;;  %890 = vmatpush3.msra.mxu1 %v623_v39 }
 0x16a   :  { %856 = vmatprep.subr.mxu0 %v606_v40  ;;  %891 = vmatprep.subr.mxu1 %v638_v41 }
 0x16b   :  { %857 = vmatpush3.msra.mxu0 %v590_v42  ;;  %892 = vmatpush3.msra.mxu1 %v622_v43 }
 0x16c   :  { %858 = vmatprep.subr.mxu0 %v605_v44  ;;  %893 = vmatprep.subr.mxu1 %v637_v45 }
 0x16d   :  { %859 = vmatpush3.msra.mxu0 %v589_v46  ;;  %894 = vmatpush3.msra.mxu1 %v621_v47 }
 0x16e   :  { %860 = vmatprep.subr.mxu0 %v604_v48  ;;  %895 = vmatprep.subr.mxu1 %v636_v49 }
 0x16f   :  { %861 = vmatpush3.msra.mxu0 %v588_v50  ;;  %896 = vmatpush3.msra.mxu1 %v620_v51 }
 0x170   :  { %862 = vmatprep.subr.mxu0 %v603_v52  ;;  %897 = vmatprep.subr.mxu1 %v635_v54 }
 0x171   :  { %863 = vmatpush3.msra.mxu0 %v587_v53  ;;  %898 = vmatpush3.msra.mxu1 %v619_v55 }
 0x172   :  { %864 = vmatprep.subr.mxu0 %v602_v56  ;;  %899 = vmatprep.subr.mxu1 %v634_v57 }
 0x173   :  { %865 = vmatpush3.msra.mxu0 %v586_v58  ;;  %900 = vmatpush3.msra.mxu1 %v618_v59 }
 0x174   :  { %866 = vmatprep.subr.mxu0 %v601_v60  ;;  %901 = vmatprep.subr.mxu1 %v633_v61 }
 0x175   :  { %867 = vmatpush3.msra.mxu0 %v585_v62  ;;  %902 = vmatpush3.msra.mxu1 %v617_v63 }
 0x215   :  { %v509_v0 = vpop.f32.mrf.mxu0  ;;  %v580_v1 = vpop.f32.mrf.mxu1 }
 0x217   :  { %v511_v2 = vpop.f32.mrf.mxu0  ;;  %v582_v3 = vpop.f32.mrf.mxu1 }
 0x218   :  { %720 = vmatprep.mubr.f32.mxu0 %v511_v2  ;;  %790 = vmatprep.mubr.f32.mxu1 %v582_v3 }
 0x219   :  { %721 = vmatmul.mubr.f32.vlgmr.msra.gmra.mxu0 %v509_v0  ;;  %791 = vmatmul.mubr.f32.vlgmr.msra.gmra.mxu1 %v580_v1 }
 0x2d9   :  { %v868_v4 = vpop.f32.mrf.mxu0  ;;  %v903_v5 = vpop.f32.mrf.mxu1 }
 0x2db   :  { %v869_v7 = vpop.f32.mrf.mxu0  ;;  %v904_v8 = vpop.f32.mrf.mxu1 }
 0x2dc   :  { %v870_v9 = vadd.f32 %v869_v7, %v868_v4  ;;  %v905_v11 = vadd.f32 %v904_v8, %v903_v5 }
 0x2de   :  { %v723_v10 = vadd.f32 %v870_v9, %v835_v6 }
 0x2e0   :  { %v793_v12 = vadd.f32 %v905_v11, %v723_v10 }
 0x2e2   :  { %797 = vst.msk [vmem:[#allocation2] sm:$0x3] %vm796_vm12, %v793_v12 }
 0x2e3   :  { %922 = shalt.err (!%p919_p4)
}
 0x2e4   :  { %807 = dma.vmem_to_hbm [thread:$0]  %s805_s8, 32, %s1282_s6, [#allocation3]  }
 0x2e5   :  { %931 = dma.done.wait [#allocation3], 32  }
 0x2e6   :  { %932 = vsyncadd [#allocation3], 4294967264 }
 0x2e7   :  { %811 = vsyncpa [#allocation3], 1 }

</bundles_post_ra>
